<compile_context>
chip_gen: v5e
topology: v5e:2x2
jax: 0.10.0
libtpu: 0.0.40
codegen_flags: <defaults>
</compile_context>

<pallas_src>
import functools

import jax
import jax.numpy as jnp
from jax import lax
from jax.experimental import pallas as pl
from jax.experimental.pallas import tpu as pltpu


def _temporal_block_kernel(x_ref, halo_ref, w1_ref, b1_ref, w2_ref, b2_ref,
                           wd_ref, bd_ref, o_ref, *, kernel_size, dilation,
                           has_downsample):
    # x_ref   : (C_in , TL)      current time tile (bf16)
    # halo_ref: (C_in , HW)      the HW samples preceding this tile (zeros at t=0)
    # w1_ref  : (C_out, K*C_in)  tap-stacked conv1 weight (bf16)
    # w2_ref  : (C_out, K*C_out) tap-stacked conv2 weight (bf16)
    # wd_ref  : (C_out, C_in)    1x1 downsample conv (bf16)
    # b*_ref  : (C_out, 1)       biases (f32)
    # o_ref   : (C_out, TL)      output tile (f32)
    C_out, TL = o_ref.shape
    d = dilation
    p = d * (kernel_size - 1)

    x_cur = x_ref[...]                                      # (C_in, TL) bf16

    # Left context of width 2p: conv1 is recomputed over TL + p positions so the
    # second conv has its full causal receptive field inside this tile.
    if p > 0:
        need = 2 * p
        HW = halo_ref.shape[1]
        take = min(need, HW)
        pieces = []
        if need > take:                                     # only when nt == 1 (pure zeros)
            pieces.append(jnp.zeros((x_cur.shape[0], need - take), x_cur.dtype))
        pieces.append(halo_ref[:, HW - take:])              # (C_in, take)
        pieces.append(x_cur)
        x_ext = jnp.concatenate(pieces, axis=1)             # (C_in, TL + 2p)
    else:
        x_ext = x_cur

    # ---- conv1 (causal, dilated): im2col -> single MXU matmul, then ReLU ----
    Lh = TL + p
    rhs1 = jnp.concatenate(
        [x_ext[:, j * d: j * d + Lh] for j in range(kernel_size)], axis=0)   # (K*C_in, TL+p)
    h = jnp.dot(w1_ref[...], rhs1, preferred_element_type=jnp.float32)
    h = jnp.maximum(h + b1_ref[...], 0.0).astype(x_cur.dtype)                # (C_out, TL+p) bf16

    # ---- conv2 (causal, dilated): im2col -> single MXU matmul, then ReLU ----
    rhs2 = jnp.concatenate(
        [h[:, j * d: j * d + TL] for j in range(kernel_size)], axis=0)       # (K*C_out, TL)
    out = jnp.dot(w2_ref[...], rhs2, preferred_element_type=jnp.float32)
    out = jnp.maximum(out + b2_ref[...], 0.0)                                # (C_out, TL) f32

    # ---- residual branch (1x1 conv iff C_in != C_out) + final ReLU ----
    if has_downsample:
        res = jnp.dot(wd_ref[...], x_cur,
                      preferred_element_type=jnp.float32) + bd_ref[...]
    else:
        res = x_cur.astype(jnp.float32)

    o_ref[...] = jnp.maximum(out + res, 0.0)


def temporal_block(x, w1, b1, w2, b2, wd, bd, *, kernel_size, dilation):
    """x: (B, C_in, L) f32 -> (B, C_out, L) f32.  w1: (K, C_out, C_in), w2: (K, C_out, C_out)."""
    B, C_in, L = x.shape
    K = kernel_size
    C_out = w1.shape[1]
    d = dilation
    p = d * (K - 1)                      # == padding in the PyTorch module
    has_downsample = (C_in != C_out)

    # Lane-dense time axis: pad L up to a multiple of 128.
    L_pad = max(128, ((L + 127) // 128) * 128)

    # Time tile: multiple of 128 dividing L_pad, big enough to hold the 2p halo.
    TL = L_pad
    for cand in (512, 256, 128):
        if L_pad % cand == 0 and 2 * p <= cand:
            TL = cand
            break
    nt = L_pad // TL

    # Halo block width (lane multiple, >= 2p whenever nt > 1).
    HW = max(128, ((2 * p + 127) // 128) * 128)
    HW = min(HW, TL)

    cdt = jnp.bfloat16
    x_c = x.astype(cdt)
    # Main input: right-padded to L_pad (extra columns are zeros; their outputs are sliced off).
    x_main = jnp.pad(x_c, ((0, 0), (0, 0), (0, L_pad - L)))
    # Halo input: for tile t, the HW samples preceding time t*TL (zeros for t == 0).
    x_lp = jnp.pad(x_c, ((0, 0), (0, 0), (TL, L_pad - L)))                 # (B, C_in, (nt+1)*TL)
    halo = x_lp.reshape(B, C_in, nt + 1, TL)[:, :, :nt, TL - HW:]          # (B, C_in, nt, HW)
    halo = jnp.transpose(halo, (0, 2, 1, 3)).reshape(B * nt, C_in, HW)     # (B*nt, C_in, HW)

    # im2col-stacked weights: row block j of the RHS is tap j, so weight columns
    # must be [W[0,o,:], W[1,o,:], ...] per output channel.
    w1s = jnp.transpose(w1, (1, 0, 2)).reshape(C_out, K * C_in).astype(cdt)
    w2s = jnp.transpose(w2, (1, 0, 2)).reshape(C_out, K * C_out).astype(cdt)
    wdc = wd.astype(cdt)
    b1f = b1.astype(jnp.float32)
    b2f = b2.astype(jnp.float32)
    bdf = bd.astype(jnp.float32)

    kernel = functools.partial(
        _temporal_block_kernel,
        kernel_size=K, dilation=d, has_downsample=has_downsample)

    out = pl.pallas_call(
        kernel,
        out_shape=jax.ShapeDtypeStruct((B, C_out, L_pad), jnp.float32),
        grid=(B, nt),
        in_specs=[
            pl.BlockSpec((None, C_in, TL), lambda b, t: (b, 0, t)),            # x current tile
            pl.BlockSpec((None, C_in, HW), lambda b, t: (b * nt + t, 0, 0)),   # halo (left context)
            pl.BlockSpec((C_out, K * C_in), lambda b, t: (0, 0)),              # w1 stacked
            pl.BlockSpec((C_out, 1), lambda b, t: (0, 0)),                     # b1
            pl.BlockSpec((C_out, K * C_out), lambda b, t: (0, 0)),             # w2 stacked
            pl.BlockSpec((C_out, 1), lambda b, t: (0, 0)),                     # b2
            pl.BlockSpec((C_out, C_in), lambda b, t: (0, 0)),                  # wd (1x1 downsample)
            pl.BlockSpec((C_out, 1), lambda b, t: (0, 0)),                     # bd
        ],
        out_specs=pl.BlockSpec((None, C_out, TL), lambda b, t: (b, 0, t)),
        compiler_params=pltpu.CompilerParams(
            dimension_semantics=("parallel", "parallel")),
    )(x_main, halo, w1s, b1f, w2s, b2f, wdc, bdf)

    return out[:, :, :L]


# ------------------------- pure-JAX reference (f32) -------------------------
def _conv1d_ref(x, w_oik, b, dilation, padding):
    y = lax.conv_general_dilated(
        x, w_oik, window_strides=(1,), padding=[(padding, padding)],
        rhs_dilation=(dilation,), dimension_numbers=('NCH', 'OIH', 'NCH'))
    return y + b[None, :, None]


def temporal_block_ref(x, w1, b1, w2, b2, wd, bd, kernel_size, dilation):
    L = x.shape[-1]
    C_in, C_out = x.shape[1], w1.shape[1]
    p = dilation * (kernel_size - 1)
    w1_oik = jnp.transpose(w1, (1, 2, 0))
    w2_oik = jnp.transpose(w2, (1, 2, 0))
    h = _conv1d_ref(x, w1_oik, b1[:, 0], dilation, p)[:, :, :L]   # chomp
    h = jnp.maximum(h, 0.0)
    o = _conv1d_ref(h, w2_oik, b2[:, 0], dilation, p)[:, :, :L]   # chomp
    o = jnp.maximum(o, 0.0)
    if C_in != C_out:
        res = _conv1d_ref(x, wd[:, :, None], bd[:, 0], 1, 0)
    else:
        res = x
    return jnp.maximum(o + res, 0.0)


if __name__ == "__main__":
    def run_case(B, C_in, C_out, L, kernel_size, dilation, key):
        ks = jax.random.split(key, 7)
        x = jax.random.normal(ks[0], (B, C_in, L), jnp.float32)
        # deterministic synthetic params; conv weights ~ N(0, 0.01) as in init_weights
        w1 = 0.01 * jax.random.normal(ks[1], (kernel_size, C_out, C_in), jnp.float32)
        b1 = 0.10 * jax.random.normal(ks[2], (C_out, 1), jnp.float32)
        w2 = 0.01 * jax.random.normal(ks[3], (kernel_size, C_out, C_out), jnp.float32)
        b2 = 0.10 * jax.random.normal(ks[4], (C_out, 1), jnp.float32)
        wd = 0.01 * jax.random.normal(ks[5], (C_out, C_in), jnp.float32)
        bd = 0.10 * jax.random.normal(ks[6], (C_out, 1), jnp.float32)

        out = temporal_block(x, w1, b1, w2, b2, wd, bd,
                             kernel_size=kernel_size, dilation=dilation)
        out = jax.block_until_ready(out)

        ref = temporal_block_ref(x, w1, b1, w2, b2, wd, bd, kernel_size, dilation)
        assert out.shape == (B, C_out, L), out.shape
        err = float(jnp.max(jnp.abs(out - ref)))
        # bf16 operands with f32 accumulation -> loosened tolerance vs. the f32 reference
        assert jnp.allclose(out, ref, atol=1e-2, rtol=1e-2), err

    key = jax.random.PRNGKey(0)
    k1, k2 = jax.random.split(key)
    # n_inputs=4, n_outputs=8, kernel_size=3, stride=1, dilation=2, padding=4 (standard TCN usage)
    run_case(2, 4, 8, 16, 3, 2, k1)
    # identity-residual + multi-time-tile case (exercises the halo path)
    run_case(1, 8, 8, 300, 3, 4, k2)
    print("KERNEL_OK")
</pallas_src>

<mosaic_0001>
module attributes {stable_mosaic.version = 11 : i64} {
  func.func @_temporal_block_kernel(%arg0: i32, %arg1: i32, %arg2: memref<1x4x128xbf16, #tpu.memory_space<vmem>>, %arg3: memref<1x4x128xbf16, #tpu.memory_space<vmem>>, %arg4: memref<8x12xbf16, #tpu.memory_space<vmem>>, %arg5: memref<8x1xf32, #tpu.memory_space<vmem>>, %arg6: memref<8x24xbf16, #tpu.memory_space<vmem>>, %arg7: memref<8x1xf32, #tpu.memory_space<vmem>>, %arg8: memref<8x4xbf16, #tpu.memory_space<vmem>>, %arg9: memref<8x1xf32, #tpu.memory_space<vmem>>, %arg10: memref<1x8x128xf32, #tpu.memory_space<vmem>>) attributes {dimension_semantics = [#tpu.dimension_semantics<parallel>, #tpu.dimension_semantics<parallel>], iteration_bounds = array<i64: 2, 1>, scalar_prefetch = 0 : i64, scratch_operands = 0 : i64, tpu.core_type = #tpu.core_type<tc>, window_params = [{transform_indices = @transform_0, window_bounds = array<i64: 1, 4, 128>}, {transform_indices = @transform_1, window_bounds = array<i64: 1, 4, 128>}, {pipeline_mode = #tpu.pipeline_mode<synchronous>, transform_indices = @transform_2, window_bounds = array<i64: 8, 12>}, {pipeline_mode = #tpu.pipeline_mode<synchronous>, transform_indices = @transform_3, window_bounds = array<i64: 8, 1>}, {pipeline_mode = #tpu.pipeline_mode<synchronous>, transform_indices = @transform_4, window_bounds = array<i64: 8, 24>}, {pipeline_mode = #tpu.pipeline_mode<synchronous>, transform_indices = @transform_5, window_bounds = array<i64: 8, 1>}, {pipeline_mode = #tpu.pipeline_mode<synchronous>, transform_indices = @transform_6, window_bounds = array<i64: 8, 4>}, {pipeline_mode = #tpu.pipeline_mode<synchronous>, transform_indices = @transform_7, window_bounds = array<i64: 8, 1>}, {transform_indices = @transform_8, window_bounds = array<i64: 1, 8, 128>}]} {
    %c0 = arith.constant 0 : index
    %c0_0 = arith.constant 0 : index
    %c0_1 = arith.constant 0 : index
    %0 = vector.load %arg2[%c0, %c0_0, %c0_1] : memref<1x4x128xbf16, #tpu.memory_space<vmem>>, vector<1x4x128xbf16>
    %1 = vector.shape_cast %0 : vector<1x4x128xbf16> to vector<4x128xbf16>
    %c0_2 = arith.constant 0 : index
    %c0_3 = arith.constant 0 : index
    %c120 = arith.constant 120 : index
    %2 = vector.load %arg3[%c0_2, %c0_3, %c120] : memref<1x4x128xbf16, #tpu.memory_space<vmem>>, vector<1x4x8xbf16>
    %3 = vector.shape_cast %2 : vector<1x4x8xbf16> to vector<4x8xbf16>
    %4 = tpu.concatenate %3, %1 in 1 : vector<4x8xbf16>, vector<4x128xbf16> -> vector<4x136xbf16>
    %5 = vector.extract_strided_slice %4 {offsets = [0, 0], sizes = [4, 132], strides = [1, 1]} : vector<4x136xbf16> to vector<4x132xbf16>
    %6 = vector.extract_strided_slice %4 {offsets = [0, 2], sizes = [4, 132], strides = [1, 1]} : vector<4x136xbf16> to vector<4x132xbf16>
    %7 = vector.extract_strided_slice %4 {offsets = [0, 4], sizes = [4, 132], strides = [1, 1]} : vector<4x136xbf16> to vector<4x132xbf16>
    %8 = tpu.concatenate %5, %6, %7 in 0 : vector<4x132xbf16>, vector<4x132xbf16>, vector<4x132xbf16> -> vector<12x132xbf16>
    %c0_4 = arith.constant 0 : index
    %c0_5 = arith.constant 0 : index
    %9 = vector.load %arg4[%c0_4, %c0_5] : memref<8x12xbf16, #tpu.memory_space<vmem>>, vector<8x12xbf16>
    %cst = arith.constant dense<0.000000e+00> : vector<8x132xf32>
    %10 = tpu.matmul %9, %8, %cst {dimension_numbers = #tpu.dot_dimension_numbers<[1], [0], [0], [1], [0, 0, 1, 1], [], []>} : vector<8x12xbf16>, vector<12x132xbf16>, vector<8x132xf32> -> vector<8x132xf32>
    %c0_6 = arith.constant 0 : index
    %c0_7 = arith.constant 0 : index
    %11 = vector.load %arg5[%c0_6, %c0_7] : memref<8x1xf32, #tpu.memory_space<vmem>>, vector<8x1xf32>
    %12 = vector.broadcast %11 : vector<8x1xf32> to vector<8x132xf32>
    %13 = arith.addf %10, %12 : vector<8x132xf32>
    %cst_8 = arith.constant 0.000000e+00 : f32
    %14 = vector.broadcast %cst_8 : f32 to vector<8x132xf32>
    %15 = arith.maximumf %13, %14 : vector<8x132xf32>
    %16 = arith.truncf %15 : vector<8x132xf32> to vector<8x132xbf16>
    %17 = vector.extract_strided_slice %16 {offsets = [0, 0], sizes = [8, 128], strides = [1, 1]} : vector<8x132xbf16> to vector<8x128xbf16>
    %18 = vector.extract_strided_slice %16 {offsets = [0, 2], sizes = [8, 128], strides = [1, 1]} : vector<8x132xbf16> to vector<8x128xbf16>
    %19 = vector.extract_strided_slice %16 {offsets = [0, 4], sizes = [8, 128], strides = [1, 1]} : vector<8x132xbf16> to vector<8x128xbf16>
    %20 = tpu.concatenate %17, %18, %19 in 0 : vector<8x128xbf16>, vector<8x128xbf16>, vector<8x128xbf16> -> vector<24x128xbf16>
    %c0_9 = arith.constant 0 : index
    %c0_10 = arith.constant 0 : index
    %21 = vector.load %arg6[%c0_9, %c0_10] : memref<8x24xbf16, #tpu.memory_space<vmem>>, vector<8x24xbf16>
    %cst_11 = arith.constant dense<0.000000e+00> : vector<8x128xf32>
    %22 = tpu.matmul %21, %20, %cst_11 {dimension_numbers = #tpu.dot_dimension_numbers<[1], [0], [0], [1], [0, 0, 1, 1], [], []>} : vector<8x24xbf16>, vector<24x128xbf16>, vector<8x128xf32> -> vector<8x128xf32>
    %c0_12 = arith.constant 0 : index
    %c0_13 = arith.constant 0 : index
    %23 = vector.load %arg7[%c0_12, %c0_13] : memref<8x1xf32, #tpu.memory_space<vmem>>, vector<8x1xf32>
    %24 = vector.broadcast %23 : vector<8x1xf32> to vector<8x128xf32>
    %25 = arith.addf %22, %24 : vector<8x128xf32>
    %cst_14 = arith.constant 0.000000e+00 : f32
    %26 = vector.broadcast %cst_14 : f32 to vector<8x128xf32>
    %27 = arith.maximumf %25, %26 : vector<8x128xf32>
    %c0_15 = arith.constant 0 : index
    %c0_16 = arith.constant 0 : index
    %28 = vector.load %arg8[%c0_15, %c0_16] : memref<8x4xbf16, #tpu.memory_space<vmem>>, vector<8x4xbf16>
    %cst_17 = arith.constant dense<0.000000e+00> : vector<8x128xf32>
    %29 = tpu.matmul %28, %1, %cst_17 {dimension_numbers = #tpu.dot_dimension_numbers<[1], [0], [0], [1], [0, 0, 1, 1], [], []>} : vector<8x4xbf16>, vector<4x128xbf16>, vector<8x128xf32> -> vector<8x128xf32>
    %c0_18 = arith.constant 0 : index
    %c0_19 = arith.constant 0 : index
    %30 = vector.load %arg9[%c0_18, %c0_19] : memref<8x1xf32, #tpu.memory_space<vmem>>, vector<8x1xf32>
    %31 = vector.broadcast %30 : vector<8x1xf32> to vector<8x128xf32>
    %32 = arith.addf %29, %31 : vector<8x128xf32>
    %33 = arith.addf %27, %32 : vector<8x128xf32>
    %cst_20 = arith.constant 0.000000e+00 : f32
    %34 = vector.broadcast %cst_20 : f32 to vector<8x128xf32>
    %35 = arith.maximumf %33, %34 : vector<8x128xf32>
    %c0_21 = arith.constant 0 : index
    %c0_22 = arith.constant 0 : index
    %c0_23 = arith.constant 0 : index
    %36 = vector.load %arg10[%c0_21, %c0_22, %c0_23] : memref<1x8x128xf32, #tpu.memory_space<vmem>>, vector<1x8x128xf32>
    %37 = vector.shape_cast %36 : vector<1x8x128xf32> to vector<8x128xf32>
    %38 = vector.shape_cast %35 : vector<8x128xf32> to vector<1x8x128xf32>
    tpu.vector_store %arg10[%c0_21, %c0_22, %c0_23], %38 {strides = array<i32>} : memref<1x8x128xf32, #tpu.memory_space<vmem>>, vector<1x8x128xf32>,
    return
  }
  func.func @transform_0(%arg0: i32, %arg1: i32) -> (i32, i32, i32) {
    %c0_i32 = arith.constant 0 : i32
    %c0_i32_0 = arith.constant 0 : i32
    return %arg0, %c0_i32, %arg1 : i32, i32, i32
  }
  func.func @transform_1(%arg0: i32, %arg1: i32) -> (i32, i32, i32) {
    %c1_i32 = arith.constant 1 : i32
    %0 = arith.muli %arg0, %c1_i32 : i32
    %1 = arith.addi %0, %arg1 : i32
    %c0_i32 = arith.constant 0 : i32
    %c0_i32_0 = arith.constant 0 : i32
    %c0_i32_1 = arith.constant 0 : i32
    return %1, %c0_i32, %c0_i32_0 : i32, i32, i32
  }
  func.func @transform_2(%arg0: i32, %arg1: i32) -> (i32, i32) {
    %c0_i32 = arith.constant 0 : i32
    %c0_i32_0 = arith.constant 0 : i32
    %c0_i32_1 = arith.constant 0 : i32
    return %c0_i32, %c0_i32_0 : i32, i32
  }
  func.func @transform_3(%arg0: i32, %arg1: i32) -> (i32, i32) {
    %c0_i32 = arith.constant 0 : i32
    %c0_i32_0 = arith.constant 0 : i32
    %c0_i32_1 = arith.constant 0 : i32
    return %c0_i32, %c0_i32_0 : i32, i32
  }
  func.func @transform_4(%arg0: i32, %arg1: i32) -> (i32, i32) {
    %c0_i32 = arith.constant 0 : i32
    %c0_i32_0 = arith.constant 0 : i32
    %c0_i32_1 = arith.constant 0 : i32
    return %c0_i32, %c0_i32_0 : i32, i32
  }
  func.func @transform_5(%arg0: i32, %arg1: i32) -> (i32, i32) {
    %c0_i32 = arith.constant 0 : i32
    %c0_i32_0 = arith.constant 0 : i32
    %c0_i32_1 = arith.constant 0 : i32
    return %c0_i32, %c0_i32_0 : i32, i32
  }
  func.func @transform_6(%arg0: i32, %arg1: i32) -> (i32, i32) {
    %c0_i32 = arith.constant 0 : i32
    %c0_i32_0 = arith.constant 0 : i32
    %c0_i32_1 = arith.constant 0 : i32
    return %c0_i32, %c0_i32_0 : i32, i32
  }
  func.func @transform_7(%arg0: i32, %arg1: i32) -> (i32, i32) {
    %c0_i32 = arith.constant 0 : i32
    %c0_i32_0 = arith.constant 0 : i32
    %c0_i32_1 = arith.constant 0 : i32
    return %c0_i32, %c0_i32_0 : i32, i32
  }
  func.func @transform_8(%arg0: i32, %arg1: i32) -> (i32, i32, i32) {
    %c0_i32 = arith.constant 0 : i32
    %c0_i32_0 = arith.constant 0 : i32
    return %arg0, %c0_i32, %arg1 : i32, i32, i32
  }
}

</mosaic_0001>

<bundles_post_ra>
// kernel: tpu_custom_call.1
= control target key start
LH: loop header
LB: loop body
LE: loop exit
PB: predicated region body
PF: predicated region fallthrough
CT: control target
= control target key end

     0   :  { %13 = vsyncpa [#allocation3], 0  ;;  %s964_s0 = inlined_call_operand.vmem [shape: bf16[2,4,128], index: 0, kind: input, shape index: {}]   ;;  %s965_s1 = inlined_call_operand.vmem [shape: bf16[2,4,128], index: 1, kind: input, shape index: {}]   ;;  %s966_s2 = inlined_call_operand.vmem [shape: bf16[8,12], index: 2, kind: input, shape index: {}]   ;;  %s967_s3 = inlined_call_operand.vmem [shape: f32[8,1], index: 3, kind: input, shape index: {}]   ;;  %s968_s4 = inlined_call_operand.vmem [shape: bf16[8,24], index: 4, kind: input, shape index: {}]   ;;  %s969_s5 = inlined_call_operand.vmem [shape: f32[8,1], index: 5, kind: input, shape index: {}]   ;;  %s970_s6 = inlined_call_operand.vmem [shape: bf16[8,4], index: 6, kind: input, shape index: {}]   ;;  %s971_s7 = inlined_call_operand.vmem [shape: f32[8,1], index: 7, kind: input, shape index: {}]   ;;  %s972_s8 = inlined_call_operand.hbm [shape: f32[2,8,128], index: 8, kind: output, shape index: {}]  }
   0x1   :  { %15 = vsyncpa [#allocation3 + $0x1], 0  ;;  %s823_s27 = smov 0   ;;  %s825_s28 = smov 0  }
   0x2   :  { %s827_s29 = smov 0   ;;  %s829_s30 = smov 0  }
   0x3   :  { %s831_s9 = smov 0   ;;  %s833_s10 = smov 0  }
   0x4 LB: > { %s617_s11 = sadd.s32 4294967295, %s772_s10   ;;  %s618_s12 = sadd.s32 4294967294, %s772_s10   ;;  %s772_s10 = sphi %s833_s10, %s21_s10   ;;  %s768_s9 = sphi %s831_s9, %s979_s9   ;;  %s764_s30 = sphi %s829_s30, %s978_s30   ;;  %s760_s29 = sphi %s827_s29, %s977_s29   ;;  %s756_s28 = sphi %s825_s28, %s976_s28   ;;  %s752_s27 = sphi %s823_s27, %s975_s27  }
   0x5   : > { %s33_s13 = sadd.s32 1, %s768_s9  ;;  %s224_s14 = sadd.s32 1, %s760_s29 }
   0x6   : > { %p35_p0 = scmp.ge.s32.totalorder %s33_s13, 2  ;;  %p234_p1 = scmp.ne.s32.totalorder %s760_s29, %s756_s28 }
   0x7   : > { %p235_p2 = scmp.eq.s32.totalorder %s617_s11, 1  ;;  %p240_p3 = scmp.ne.s32.totalorder %s756_s28, %s752_s27 }
   0x8   : > { %s981_s13 = smov (%p35_p0, %s33_s13), 0  ;;  %p241_p5 = scmp.eq.s32.totalorder %s618_s12, 1 }
   0x9   : > { %p863_p4 = por %p235_p2, %p234_p1  ;;  %s219_s16 = ssub.s32 %s768_s9, %s981_s13 }
   0xa   : > { %p621_p6 = scmp.ge.s32.totalorder %s772_s10, 1  ;;  %p222_p7 = scmp.eq.s32.totalorder %s219_s16, 0 }
   0xb   : > { %p870_p8 = por %p241_p5, %p240_p3  ;;  %p296_p9 = scmp.lt.s32.totalorder %s772_s10, 3 }
   0xc   : > { %s876_s18 = scalar_select %p222_p7, %s760_s29, %s224_s14  }
   0xd   : > { %p297_p10 = pnand %p621_p6, %p296_p9 }
   0xe   : > { %p337_p11 = scmp.lt.s32.totalorder (!%p297_p10), %s764_s30, 1  ;;  %s774_s11 = smov (!%p297_p10), 8  }
   0xf   : > { %300 = sbr.rel (%p297_p10) target bundleno = 696 (0x2b8), region = 52  ;;  %s775_s12 = smov (!%p297_p10), 124  }
  0x10   : > { %s776_s14 = smov (!%p297_p10), 126   ;;  %s334_s16 = sand.u32 (!%p297_p10), 1, %s756_s28  }
  0x14   : > { %s338_s19 = scalar_select %p337_p11, %s764_s30, 1  ;;  %vm365_vm0 = vcmask 64512   ;;  %v397_v11 = vld [vmem:[%s967_s3] sm:$0xff]  ;;  %v777_v12 = vmov 0   ;;  %vm376_vm1 = vcmask 1031168   ;;  %vm386_vm2 = vcmask 1041408  }
  0x15   : > { %692 = vset.pattern.permute.xlu0 %v777_v12  ;;  %693 = vset.pattern.permute.xlu1 %v777_v12  ;;  %v461_v13 = vld [vmem:[%s969_s5] sm:$0xff]  ;;  %vm384_vm3 = vcmask 1014784   ;;  %vm391_vm4 = vcmask 1043456   ;;  %vm407_vm5 = vcmask 1045504   ;;  %vm403_vm6 = vcmask 97280  }
  0x16   : > { %s623_s20 = sshll.u32 %s338_s19, 1  ;;  %v396_v26 = vld [vmem:[%s966_s2] sm:$0xf]  ;;  %vm495_vm7 = vcmask 31744   ;;  %vm467_vm8 = vcmask 195584   ;;  %s622_s19 = sshll.u32 %s334_s16, 3 }
  0x17   : > { %s348_s23 = scalar_lea.vmem %s965_s1, %s623_s20  ;;  %s343_s26 = scalar_lea.vmem %s964_s0, %s623_s20  ;;  %v488_v42 = vld [vmem:[%s970_s6] sm:$0xf] }
  0x18   : > { %v352_v0 = vld [vmem:[%s348_s23] sm:$0x3]  ;;  %s630_s20 = sshll.u32 %s764_s30, 3  ;;  %s336_s24 = scalar_lea.vmem [#allocation2], %s622_s19 }
  0x19   : > { %354 = vst [vmem:[#allocation1] ss:$4 sm:$0xff] %v352_v0  ;;  %v886_v1 = vld [vmem:[%s343_s26] sm:$0x3]  ;;  %s529_s23 = scalar_lea.hbm %s972_s8, %s630_s20  ;;  %s531_s25 = sshll.u32 %s336_s24, 4  ;;  %s532_s25 = int_to_ptr.vmem [resolvable:$true] %s531_s25 }
  0x1a   : > { %v499_v41 = vsel %vm386_vm2, %v886_v1, 0  ;;  %v489_v43 = vld [vmem:[%s971_s7] sm:$0xff]  ;;  %s533_s26 = sshll.u32 %s529_s23, 4  ;;  %s518_s30 = scalar_lea.sflag [#allocation3], %s334_s16  ;;  %s534_s26 = int_to_ptr.hbm [resolvable:$true] %s533_s26 }
  0x1b   : > { %508 = vmatpush.bf16.msra.mxu3 %v499_v41  ;;  %v460_v52 = vld [vmem:[%s968_s4] sm:$0xf]  ;;  %s714_s19 = scalar_lea.hbm %s972_s8, 16 }
  0x1e   : > { %628 = vmatmul.msk.bf16.vlgmr.msra.gmra.mxu3 %vm495_vm7, %v488_v42 }
  0x20   : > { %v355_v2 = vld.sshfl [vmem:[#allocation1] sm:$0xff pattern:$0x73625140] }
  0x21   : > { %357 = vrot.lane.b32.xlu0 %v355_v2, %s774_s11  ;;  %360 = vst [vmem:[#allocation1] ss:$4 sm:$0xff] %v886_v1 }
  0x28   : > { %v361_v3 = vld.sshfl [vmem:[#allocation1] sm:$0xff pattern:$0x73625140] }
  0x29   : > { %363 = vrot.lane.b32.xlu0 %v361_v3, %s774_s11  ;;  %s708_s11 = sshra.s32 %s534_s26, 4  ;;  %s709_s11 = int_to_ptr.hbm [resolvable:$true] %s708_s11 }
  0x2a   : > { %p715_p1 = scmp.lt.s32.totalorder %s709_s11, %s972_s8 }
  0x31   : > { %400 = vperm.xlu0 %692, %v397_v11  }
  0x39   : > { %464 = vperm.xlu0 %692, %v461_v13  }
  0x93   : > { %v358_v4 = vpop.permute.xlu0 %357 }
  0x9b   : > { %v364_v5 = vpop.permute.xlu0 %363 }
  0x9c   : > { %v368_v6 = vsel %vm365_vm0, %v358_v4, %v364_v5  ;;  %v379_v9 = vrot.slane %v364_v5, 4  ;;  %v371_v10 = vrot.slane %v364_v5, 6 }
  0x9d   : > { %v378_v7 = vrot.slane %v368_v6, 4  ;;  %v370_v8 = vrot.slane %v368_v6, 6 }
  0x9f   : > { %380 = vrot.lane.b32.xlu2 %v378_v7, %s775_s12  ;;  %372 = vrot.lane.b32.xlu1 %v370_v8, %s776_s14 }
  0xa1   : > { %v510_v53 = vpop.f32.mrf.mxu3 }
  0xa3   : > { %v401_v27 = vpop.permute.xlu0 %400 }
  0xa7   : > { %382 = vrot.lane.b32.xlu2 %v379_v9, %s775_s12  ;;  %374 = vrot.lane.b32.xlu1 %v371_v10, %s776_s14 }
  0xa9   : > { %v512_v54 = vpop.f32.mrf.mxu3 }
  0xab   : > { %v465_v56 = vpop.permute.xlu0 %464 }
  0xf9   : > { %v381_v14 = vpop.permute.xlu2 %380 }
 0x101   : > { %v383_v16 = vpop.permute.xlu2 %382 }
 0x102   : > { %v385_v20 = vsel %vm384_vm3, %v381_v14, %v383_v16 }
 0x111   : > { %v373_v15 = vpop.permute.xlu1 %372 }
 0x119   : > { %v375_v17 = vpop.permute.xlu1 %374 }
 0x11a   : > { %v377_v18 = vsel %vm376_vm1, %v373_v15, %v375_v17  ;;  %v390_v19 = vsel %vm386_vm2, %v364_v5, %v375_v17 }
 0x11b   : > { %v395_v21 = vsel %vm391_vm4, %v390_v19, %v383_v16  ;;  %v388_v22 = vsel %vm386_vm2, %v368_v6, %v377_v18 }
 0x11c   : > { %v410_v23 = vsel %vm407_vm5, %v395_v21, 0  ;;  %v393_v24 = vsel %vm391_vm4, %v388_v22, %v385_v20 }
 0x11d   : > { %432 = vmatpush.bf16.msra.mxu1 %v410_v23  ;;  %v408_v25 = vsel %vm407_vm5, %v393_v24, 0 }
 0x11e   : > { %419 = vmatpush.bf16.msra.mxu0 %v408_v25 }
 0x120   : > { %626 = vmatmul.msk.bf16.vlgmr.msra.gmra.mxu1 %vm403_vm6, %v396_v26 }
 0x121   : > { %625 = vmatmul.msk.bf16.vlgmr.msra.gmra.mxu0 %vm403_vm6, %v396_v26 }
 0x19d   : > { %v434_v28 = vpop.f32.mrf.mxu1 }
 0x19e   : > { %v435_v29 = vadd.f32 %v434_v28, %v401_v27  ;;  %v421_v30 = vpop.f32.mrf.mxu0 }
 0x19f   : > { %v422_v31 = vadd.f32 %v421_v30, %v401_v27 }
 0x1a0   : > { %v439_v32 = vmax.f32 %v435_v29, 0.0 }
 0x1a1   : > { %v438_v33 = vmax.f32 %v422_v31, 0.0 }
 0x1a3   : > { %v440_v34 = vpack.c.bf16 %v439_v32, %v438_v33 }
 0x1a5   : > { %v436_v35 = vpop.f32.mrf.mxu1  ;;  %v443_v36 = vunpack.c.h.b16 %v440_v34  ;;  %v442_v37 = vunpack.c.l.b16 %v440_v34 }
 0x1a6   : > { %v423_v38 = vpop.f32.mrf.mxu0 }
 0x1a7   : > { %v445_v39 = vpack.c.b16 %v443_v36, %v443_v36  ;;  %v444_v40 = vpack.c.b16 %v442_v37, %v442_v37 }
 0x1a9   : > { %453 = vrot.lane.b32.xlu2 %v445_v39, %s775_s12  ;;  %451 = vrot.lane.b32.xlu1 %v444_v40, %s775_s12  ;;  %s710_s12 = scalar_lea.hbm %s709_s11, 8 }
 0x1aa   : > { %p711_p12 = scmp.ne.s32.totalorder %s709_s11, %s710_s12  ;;  %p716_p2 = scmp.lt.s32.totalorder %s714_s19, %s710_s12 }
 0x1ac   : > { %p712_p13 = pnand %p711_p12, %p863_p4  ;;  %p717_p3 = por %p716_p2, %p715_p1 }
 0x1ae   : > { %p713_p0 = pneg %p712_p13 }
 0x1b0   : > { %p718_p5 = pnand %p717_p3, %p713_p0 }
 0x1b1   : > { %448 = vrot.lane.b32.xlu2 %v445_v39, %s776_s14  ;;  %446 = vrot.lane.b32.xlu1 %v444_v40, %s776_s14 }
 0x1b9   : > { %492 = vperm.xlu1 %693, %v489_v43  }
 0x203   : > { %v454_v44 = vpop.permute.xlu2 %453 }
 0x20b   : > { %v449_v48 = vpop.permute.xlu2 %448 }
 0x21b   : > { %v452_v45 = vpop.permute.xlu1 %451 }
 0x21c   : > { %v455_v46 = vsel %vm384_vm3, %v452_v45, %v454_v44 }
 0x21d   : > { %v472_v47 = vsel %vm391_vm4, %v455_v46, 0 }
 0x21e   : > { %480 = vmatpush.bf16.msra.mxu2 %v472_v47 }
 0x223   : > { %v447_v49 = vpop.permute.xlu1 %446 }
 0x224   : > { %v450_v50 = vsel %vm376_vm1, %v447_v49, %v449_v48 }
 0x225   : > { %v458_v51 = vsel %vm391_vm4, %v440_v34, %v450_v50 }
 0x226   : > { %481 = vmatpush.bf16.msra.mxu2 %v458_v51 }
 0x229   : > { %627 = vmatmul.msk.bf16.vlgmr.msra.gmra.mxu2 %vm467_vm8, %v460_v52 }
 0x22b   : > { %v493_v55 = vpop.permute.xlu1 %492 }
 0x22c   : > { %v511_v59 = vadd.f32 %v510_v53, %v493_v55 }
 0x2ac   : > { %v483_v57 = vpop.f32.mrf.mxu2 }
 0x2ad   : > { %v484_v58 = vadd.f32 %v483_v57, %v465_v56 }
 0x2af   : > { %v487_v60 = vmax.f32 %v484_v58, 0.0 }
 0x2b1   : > { %v514_v61 = vadd.f32 %v511_v59, %v487_v60 }
 0x2b3   : > { %v515_v62 = vmax.f32 %v514_v61, 0.0 }
 0x2b4   : > { %v485_v63 = vpop.f32.mrf.mxu2 }
 0x2b5   : > { %516 = vst [vmem:[%s336_s24] sm:$0xff] %v515_v62 }
 0x2b6   : > { %721 = shalt.err (!%p718_p5)
}
 0x2b7   : > { %633 = dma.vmem_to_hbm [thread:$0]  (%p863_p4), %s532_s25, 128, %s534_s26, %s518_s30  }
 0x2b8 PF: > { %p639_p6 = scmp.ge.s32.totalorder %s772_s10, 2  ;;  %s545_s16 = sand.u32 1, %s752_s27  }
 0x2b9   : > { %s546_s23 = scalar_lea.sflag [#allocation3], %s545_s16 }
 0x2ba   : > { %p636_p7 = pnand %p639_p6, %p870_p8 }
 0x2bc   : > { %p637_p9 = pneg %p636_p7 }
 0x2be   : > { %747 = dma.done.wait (%p637_p9), %s546_s23, 128  }
 0x2bf   : > { %749 = vsyncadd (%p637_p9), %s546_s23, 4294967168  ;;  %s21_s10 = sadd.s32 1, %s772_s10   ;;  %s975_s27 = smov %s756_s28 }
 0x2c0   : > { %p18_p10 = scmp.ge.s32.totalorder %s21_s10, 4   ;;  %s976_s28 = smov %s760_s29 }
 0x2c1   : > { %s977_s29 = smov %s876_s18  ;;  %s978_s30 = smov %s768_s9 }
 0x2c2   : > { %s979_s9 = smov %s981_s13  ;;  %20 = sbr.rel (!%p18_p10) target bundleno = 4 (0x4), region = 90 }
 0x2c7   :  { %552 = vsyncpa [#allocation3], 1 }
 0x2c8   :  { %554 = vsyncpa [#allocation3 + $0x1], 1 }

</bundles_post_ra>
